<compile_context>
chip_gen: v6e
topology: v6e:2x2x1
jax: 0.10.0
libtpu: 0.0.40
codegen_flags: <defaults>
</compile_context>

<pallas_src>
import functools

import jax
import jax.numpy as jnp
from jax.experimental import pallas as pl
from jax.experimental.pallas import tpu as pltpu

_LANE = 128      # lane width: last dim of every tile padded to this
_SUBLANE = 8     # sublane width: batch padded to a multiple of this


def _round_up(n, m):
    return ((n + m - 1) // m) * m


# ---------------------------------------------------------------------------
# Fused kernel: whole MLP in one invocation.
#   inputs : x (M_pad, K_pad), then W_0 (K_pad, N_pad), b_0 (1, N_pad), W_1, b_1, ...
#   outputs: y_0 (M_pad, N_pad), y_1, ..., y_{L-1}
# Weights are already transposed to (K, N) layout and zero-padded, so the
# matmul is a straight jnp.dot on lane-dense tiles (no XLU transpose).
# ---------------------------------------------------------------------------
def _fused_mlp_kernel(x_ref, *refs, num_layers):
    wb = refs[: 2 * num_layers]
    outs = refs[2 * num_layers:]

    h = x_ref[...]                                   # (M_pad, K_pad) f32
    for i in range(num_layers):
        w = wb[2 * i][...]                           # (K_pad_i, N_pad_i)
        b = wb[2 * i + 1][...]                       # (1, N_pad_i)
        y = jnp.dot(h, w, preferred_element_type=jnp.float32) + b
        if i < num_layers - 1:
            # F.leaky_relu(y, negative_slope=0.01)
            y = jnp.where(y > 0, y, 0.01 * y)
        outs[i][...] = y.astype(outs[i].dtype)       # lane-dense (128-wide) store
        h = y                                        # stays in vregs/VMEM


# ---------------------------------------------------------------------------
# Parameter handling.
# ---------------------------------------------------------------------------
def init_params(key, num_nodes_per_layer):
    """Deterministic init matching nn.Linear shapes: W (out, in), b (out,)."""
    params = []
    for i in range(len(num_nodes_per_layer) - 1):
        fan_in = num_nodes_per_layer[i]
        fan_out = num_nodes_per_layer[i + 1]
        key, kw, kb = jax.random.split(key, 3)
        bound = 1.0 / jnp.sqrt(fan_in)
        w = jax.random.uniform(kw, (fan_out, fan_in), jnp.float32, -bound, bound)
        b = jax.random.uniform(kb, (fan_out,), jnp.float32, -bound, bound)
        params.append((w, b))
    return params


def prepare_fused_params(params):
    """One-time prep: transpose W to (K, N) and zero-pad feature dims to 128 lanes."""
    fused = []
    for w, b in params:
        n, k = w.shape
        k_pad = _round_up(k, _LANE)
        n_pad = _round_up(n, _LANE)
        w_t = jnp.zeros((k_pad, n_pad), w.dtype).at[:k, :n].set(w.T)
        b_p = jnp.zeros((1, n_pad), b.dtype).at[0, :n].set(b)
        fused.append((w_t, b_p))
    return fused


# ---------------------------------------------------------------------------
# Wrapper: one pallas_call for the whole forward pass.
# ---------------------------------------------------------------------------
def neural_network_forward(x, fused_params, out_dims):
    """Mirror of NeuralNetwork.forward: returns (x, intermediate_outputs)."""
    num_layers = len(fused_params)
    M, K = x.shape
    m_pad = _round_up(max(M, _SUBLANE), _SUBLANE)
    k_pad = fused_params[0][0].shape[0]

    # Lane/sublane-dense, zero-padded input tile (padding is numerically exact).
    x_p = jnp.zeros((m_pad, k_pad), x.dtype).at[:M, :K].set(x)

    flat_in = [x_p]
    for w, b in fused_params:
        flat_in += [w, b]

    out_shapes = tuple(
        jax.ShapeDtypeStruct((m_pad, w.shape[1]), x.dtype) for w, _ in fused_params
    )

    def full_spec(shape):
        return pl.BlockSpec(shape, lambda: (0, 0))

    kernel = functools.partial(_fused_mlp_kernel, num_layers=num_layers)

    # Everything (x tile, full weight stack, per-layer outputs) is tiny
    # (< 1 MiB total here), so a single full-array block with no grid keeps
    # all layers on-chip in one invocation.
    # TODO(synk): for large batches, add a grid over M with
    # dimension_semantics=("parallel",) (weights resident, x tile streamed).
    outs = pl.pallas_call(
        kernel,
        out_shape=out_shapes,
        in_specs=[full_spec(a.shape) for a in flat_in],
        out_specs=tuple(full_spec(s.shape) for s in out_shapes),
        compiler_params=pltpu.CompilerParams(vmem_limit_bytes=32 * 1024 * 1024),
    )(*flat_in)

    # Slice back to the true, unpadded shapes.
    intermediates = [o[:M, :n] for o, n in zip(outs, out_dims)]
    return intermediates[-1], intermediates


# ---------------------------------------------------------------------------
# Pure-JAX reference for sanity checking.
# ---------------------------------------------------------------------------
def _reference_forward(x, params):
    inters = []
    for w, b in params[:-1]:
        y = x @ w.T + b
        x = jnp.where(y > 0, y, 0.01 * y)
        inters.append(x)
    w, b = params[-1]
    x = x @ w.T + b
    inters.append(x)
    return x, inters


if __name__ == "__main__":
    # Small, deterministic example consistent with the MLP forward:
    # num_nodes_per_layer = [len(layer) for layer in layer_nodes] -> pick [32, 64, 48, 16].
    num_nodes_per_layer = [32, 64, 48, 16]
    batch = 8

    key = jax.random.PRNGKey(0)
    key, kx = jax.random.split(key)
    x = jax.random.normal(kx, (batch, num_nodes_per_layer[0]), jnp.float32)
    params = init_params(key, num_nodes_per_layer)

    # One-time weight prep (transpose to (K, N) + lane padding), amortized.
    fused_params = prepare_fused_params(params)
    out_dims = tuple(num_nodes_per_layer[1:])

    out, intermediates = neural_network_forward(x, fused_params, out_dims)
    out = jax.block_until_ready(out)
    intermediates = [jax.block_until_ready(t) for t in intermediates]

    # Sanity check against the pure-JAX reference (final + all intermediates).
    ref_out, ref_inters = _reference_forward(x, params)
    assert out.shape == (batch, num_nodes_per_layer[-1])
    assert len(intermediates) == len(num_nodes_per_layer) - 1
    assert jnp.allclose(out, ref_out, atol=1e-5, rtol=1e-5)
    for got, want in zip(intermediates, ref_inters):
        assert got.shape == want.shape, (got.shape, want.shape)
        assert jnp.allclose(got, want, atol=1e-5, rtol=1e-5)

    print("KERNEL_OK")
</pallas_src>

<mosaic_0001>
module attributes {stable_mosaic.version = 11 : i64} {
  func.func @_fused_mlp_kernel(%arg0: memref<8x128xf32, #tpu.memory_space<vmem>>, %arg1: memref<128x128xf32, #tpu.memory_space<vmem>>, %arg2: memref<1x128xf32, #tpu.memory_space<vmem>>, %arg3: memref<128x128xf32, #tpu.memory_space<vmem>>, %arg4: memref<1x128xf32, #tpu.memory_space<vmem>>, %arg5: memref<128x128xf32, #tpu.memory_space<vmem>>, %arg6: memref<1x128xf32, #tpu.memory_space<vmem>>, %arg7: memref<8x128xf32, #tpu.memory_space<vmem>>, %arg8: memref<8x128xf32, #tpu.memory_space<vmem>>, %arg9: memref<8x128xf32, #tpu.memory_space<vmem>>) attributes {dimension_semantics = [], scalar_prefetch = 0 : i64, scratch_operands = 0 : i64, tpu.core_type = #tpu.core_type<tc>} {
    %c0 = arith.constant 0 : index
    %c0_0 = arith.constant 0 : index
    %0 = vector.load %arg0[%c0, %c0_0] : memref<8x128xf32, #tpu.memory_space<vmem>>, vector<8x128xf32>
    %c0_1 = arith.constant 0 : index
    %c0_2 = arith.constant 0 : index
    %1 = vector.load %arg1[%c0_1, %c0_2] : memref<128x128xf32, #tpu.memory_space<vmem>>, vector<128x128xf32>
    %c0_3 = arith.constant 0 : index
    %c0_4 = arith.constant 0 : index
    %2 = vector.load %arg2[%c0_3, %c0_4] : memref<1x128xf32, #tpu.memory_space<vmem>>, vector<1x128xf32>
    %cst = arith.constant dense<0.000000e+00> : vector<8x128xf32>
    %3 = tpu.matmul %0, %1, %cst {dimension_numbers = #tpu.dot_dimension_numbers<[1], [0], [0], [1], [0, 0, 1, 1], [], []>} : vector<8x128xf32>, vector<128x128xf32>, vector<8x128xf32> -> vector<8x128xf32>
    %4 = vector.broadcast %2 : vector<1x128xf32> to vector<8x128xf32>
    %5 = arith.addf %3, %4 : vector<8x128xf32>
    %cst_5 = arith.constant 0.000000e+00 : f32
    %6 = vector.broadcast %cst_5 : f32 to vector<8x128xf32>
    %7 = arith.cmpf ogt, %5, %6 : vector<8x128xf32>
    %cst_6 = arith.constant 0.00999999977 : f32
    %8 = vector.broadcast %cst_6 : f32 to vector<8x128xf32>
    %9 = arith.mulf %8, %5 : vector<8x128xf32>
    %10 = arith.select %7, %5, %9 : vector<8x128xi1>, vector<8x128xf32>
    %c0_7 = arith.constant 0 : index
    %c0_8 = arith.constant 0 : index
    %11 = vector.load %arg7[%c0_7, %c0_8] : memref<8x128xf32, #tpu.memory_space<vmem>>, vector<8x128xf32>
    tpu.vector_store %arg7[%c0_7, %c0_8], %10 {strides = array<i32>} : memref<8x128xf32, #tpu.memory_space<vmem>>, vector<8x128xf32>,
    %c0_9 = arith.constant 0 : index
    %c0_10 = arith.constant 0 : index
    %12 = vector.load %arg3[%c0_9, %c0_10] : memref<128x128xf32, #tpu.memory_space<vmem>>, vector<128x128xf32>
    %c0_11 = arith.constant 0 : index
    %c0_12 = arith.constant 0 : index
    %13 = vector.load %arg4[%c0_11, %c0_12] : memref<1x128xf32, #tpu.memory_space<vmem>>, vector<1x128xf32>
    %cst_13 = arith.constant dense<0.000000e+00> : vector<8x128xf32>
    %14 = tpu.matmul %10, %12, %cst_13 {dimension_numbers = #tpu.dot_dimension_numbers<[1], [0], [0], [1], [0, 0, 1, 1], [], []>} : vector<8x128xf32>, vector<128x128xf32>, vector<8x128xf32> -> vector<8x128xf32>
    %15 = vector.broadcast %13 : vector<1x128xf32> to vector<8x128xf32>
    %16 = arith.addf %14, %15 : vector<8x128xf32>
    %cst_14 = arith.constant 0.000000e+00 : f32
    %17 = vector.broadcast %cst_14 : f32 to vector<8x128xf32>
    %18 = arith.cmpf ogt, %16, %17 : vector<8x128xf32>
    %cst_15 = arith.constant 0.00999999977 : f32
    %19 = vector.broadcast %cst_15 : f32 to vector<8x128xf32>
    %20 = arith.mulf %19, %16 : vector<8x128xf32>
    %21 = arith.select %18, %16, %20 : vector<8x128xi1>, vector<8x128xf32>
    %c0_16 = arith.constant 0 : index
    %c0_17 = arith.constant 0 : index
    %22 = vector.load %arg8[%c0_16, %c0_17] : memref<8x128xf32, #tpu.memory_space<vmem>>, vector<8x128xf32>
    tpu.vector_store %arg8[%c0_16, %c0_17], %21 {strides = array<i32>} : memref<8x128xf32, #tpu.memory_space<vmem>>, vector<8x128xf32>,
    %c0_18 = arith.constant 0 : index
    %c0_19 = arith.constant 0 : index
    %23 = vector.load %arg5[%c0_18, %c0_19] : memref<128x128xf32, #tpu.memory_space<vmem>>, vector<128x128xf32>
    %c0_20 = arith.constant 0 : index
    %c0_21 = arith.constant 0 : index
    %24 = vector.load %arg6[%c0_20, %c0_21] : memref<1x128xf32, #tpu.memory_space<vmem>>, vector<1x128xf32>
    %cst_22 = arith.constant dense<0.000000e+00> : vector<8x128xf32>
    %25 = tpu.matmul %21, %23, %cst_22 {dimension_numbers = #tpu.dot_dimension_numbers<[1], [0], [0], [1], [0, 0, 1, 1], [], []>} : vector<8x128xf32>, vector<128x128xf32>, vector<8x128xf32> -> vector<8x128xf32>
    %26 = vector.broadcast %24 : vector<1x128xf32> to vector<8x128xf32>
    %27 = arith.addf %25, %26 : vector<8x128xf32>
    %c0_23 = arith.constant 0 : index
    %c0_24 = arith.constant 0 : index
    %28 = vector.load %arg9[%c0_23, %c0_24] : memref<8x128xf32, #tpu.memory_space<vmem>>, vector<8x128xf32>
    tpu.vector_store %arg9[%c0_23, %c0_24], %27 {strides = array<i32>} : memref<8x128xf32, #tpu.memory_space<vmem>>, vector<8x128xf32>,
    return
  }
}

</mosaic_0001>

<bundles_post_ra>
// kernel: tpu_custom_call.1
= control target key start
LH: loop header
LB: loop body
LE: loop exit
PB: predicated region body
PF: predicated region fallthrough
CT: control target
= control target key end

     0   :  { %15 = vsyncpa [#allocation3], 0  ;;  %s891_s0 = inlined_call_operand.hbm [shape: f32[8,128], index: 0, kind: input, shape index: {}]   ;;  %s892_s1 = inlined_call_operand.hbm [shape: f32[128,128], index: 1, kind: input, shape index: {}]   ;;  %s893_s2 = inlined_call_operand.vmem [shape: f32[1,128], index: 2, kind: input, shape index: {}]   ;;  %s894_s3 = inlined_call_operand.hbm [shape: f32[128,128], index: 3, kind: input, shape index: {}]   ;;  %s895_s4 = inlined_call_operand.vmem [shape: f32[1,128], index: 4, kind: input, shape index: {}]   ;;  %s896_s5 = inlined_call_operand.hbm [shape: f32[128,128], index: 5, kind: input, shape index: {}]   ;;  %s897_s6 = inlined_call_operand.vmem [shape: f32[1,128], index: 6, kind: input, shape index: {}]   ;;  %s898_s7 = inlined_call_operand.hbm [shape: f32[8,128], index: 7, kind: output, shape index: {0}]   ;;  %s899_s8 = inlined_call_operand.hbm [shape: f32[8,128], index: 8, kind: output, shape index: {1}]   ;;  %s900_s9 = inlined_call_operand.hbm [shape: f32[8,128], index: 9, kind: output, shape index: {2}]  }
   0x1   :  { %16 = vsyncpa [#allocation6], 0 }
   0x2   :  { %17 = vsyncpa [#allocation9], 0 }
   0x3   :  { %18 = vsyncpa [#allocation4], 0 }
   0x4   :  { %19 = vsyncpa [#allocation12], 0  ;;  %s737_s30 = smov [#allocation5]  }
   0x5   :  { %s35_s10 = sshll.u32 %s737_s30, 4  ;;  %s36_s10 = int_to_ptr.vmem [resolvable:$true] %s35_s10 }
   0x6   :  { %s595_s11 = scalar_lea.vmem %s36_s10, 2048  ;;  %p600_p1 = scmp.lt.s32.totalorder %s36_s10, %s36_s10 }
   0x7   :  { %p596_p0 = scmp.ne.s32.totalorder %s36_s10, %s595_s11  ;;  %p601_p2 = scmp.lt.s32.totalorder %s595_s11, %s595_s11 }
   0x9   :  { %p602_p3 = por %p601_p2, %p600_p1 }
   0xb   :  { %p603_p4 = pnand %p602_p3, %p596_p0 }
   0xd   :  { %606 = shalt.err (!%p603_p4)
}
   0xe   :  { %s738_s12 = smov 128   ;;  %s739_s13 = smov 8  }
   0xf   :  { %41 = dma.hbm_to_vmem [thread:$0]  %s892_s1, 2048, %s36_s10, [#allocation6], %s738_s12, %s738_s12, %s739_s13  }
  0x10   :  { %s740_s16 = smov [#allocation2]   ;;  %s741_s18 = smov [#allocation7]  }
  0x11   :  { %s26_s17 = sshll.u32 %s740_s16, 4  ;;  %s49_s19 = sshll.u32 %s741_s18, 4  ;;  %s27_s17 = int_to_ptr.vmem [resolvable:$true] %s26_s17  ;;  %s50_s19 = int_to_ptr.vmem [resolvable:$true] %s49_s19 }
  0x12   :  { %s615_s20 = scalar_lea.vmem %s27_s17, 128  ;;  %p620_p6 = scmp.lt.s32.totalorder %s27_s17, %s27_s17 }
  0x13   :  { %p616_p5 = scmp.ne.s32.totalorder %s27_s17, %s615_s20  ;;  %p621_p7 = scmp.lt.s32.totalorder %s615_s20, %s615_s20 }
  0x15   :  { %p622_p8 = por %p621_p7, %p620_p6 }
  0x17   :  { %p623_p9 = pnand %p622_p8, %p616_p5 }
  0x19   :  { %626 = shalt.err (!%p623_p9)
}
  0x1a   :  { %29 = dma.hbm_to_vmem [thread:$0]  %s891_s0, 128, %s27_s17, [#allocation3]  }
  0x1b   :  { %s635_s23 = scalar_lea.vmem %s50_s19, 2048  ;;  %p640_p11 = scmp.lt.s32.totalorder %s50_s19, %s50_s19 }
  0x1c   :  { %p636_p10 = scmp.ne.s32.totalorder %s50_s19, %s635_s23  ;;  %p641_p12 = scmp.lt.s32.totalorder %s635_s23, %s635_s23 }
  0x1e   :  { %p642_p13 = por %p641_p12, %p640_p11 }
  0x20   :  { %p643_p0 = pnand %p642_p13, %p636_p10 }
  0x22   :  { %646 = shalt.err (!%p643_p0)
}
  0x23   :  { %55 = dma.hbm_to_vmem [thread:$0]  %s894_s3, 2048, %s50_s19, [#allocation6], %s738_s12, %s738_s12, %s739_s13  }
  0x24   :  { %s742_s25 = smov [#allocation8]  }
  0x25   :  { %s63_s26 = sshll.u32 %s742_s25, 4  ;;  %s64_s26 = int_to_ptr.vmem [resolvable:$true] %s63_s26 }
  0x26   :  { %s655_s27 = scalar_lea.vmem %s64_s26, 2048  ;;  %p660_p2 = scmp.lt.s32.totalorder %s64_s26, %s64_s26 }
  0x27   :  { %p656_p1 = scmp.ne.s32.totalorder %s64_s26, %s655_s27  ;;  %p661_p3 = scmp.lt.s32.totalorder %s655_s27, %s655_s27 }
  0x29   :  { %p662_p4 = por %p661_p3, %p660_p2 }
  0x2b   :  { %p663_p5 = pnand %p662_p4, %p656_p1 }
  0x2d   :  { %666 = shalt.err (!%p663_p5)
}
  0x2e   :  { %69 = dma.hbm_to_vmem [thread:$0]  %s896_s5, 2048, %s64_s26, [#allocation9], %s738_s12, %s738_s12, %s739_s13  }
  0x2f   :  { %727 = dma.done.wait [#allocation3], 128  }
  0x30   :  { %728 = vsyncadd [#allocation3], 4294967168 }
  0x31   :  { %729 = dma.done.wait [#allocation6], 4096  }
  0x32   :  { %730 = vsyncadd [#allocation6], 4294963200 }
  0x33   :  { %731 = dma.done.wait [#allocation9], 2048  }
  0x34   :  { %732 = vsyncadd [#allocation9], 4294965248  ;;  %v743_v0 = vmov 0.0   ;;  %vm744_vm0 = vmmov 0   ;;  %v100_v1 = vld [vmem:[#allocation5 + $0x78] sm:$0xff]  ;;  %v99_v2 = vld [vmem:[#allocation5 + $0x70] sm:$0xff] }
  0x35   :  { %471 = vmatprep.subr.mxu0 %v743_v0  ;;  %503 = vmatprep.mubr.msk.f32.mxu0 %vm744_vm0, %v743_v0  ;;  %v98_v3 = vld [vmem:[#allocation5 + $0x68] sm:$0xff]  ;;  %v97_v4 = vld [vmem:[#allocation5 + $0x60] sm:$0xff]  ;;  %v197_v5 = vld [vmem:[#allocation7 + $0x78] sm:$0xff]  ;;  %s745_s30 = smov [#allocation11]   ;;  %s746_s11 = smov [#allocation10]  }
  0x36   :  { %506 = vmatprep.subr.mxu1 %v743_v0  ;;  %538 = vmatprep.mubr.msk.f32.mxu1 %vm744_vm0, %v743_v0  ;;  %v96_v6 = vld [vmem:[#allocation5 + $0x58] sm:$0xff]  ;;  %v196_v7 = vld [vmem:[#allocation7 + $0x70] sm:$0xff]  ;;  %v195_v8 = vld [vmem:[#allocation7 + $0x68] sm:$0xff]  ;;  %s389_s10 = sshll.u32 %s745_s30, 4  ;;  %s379_s12 = sshll.u32 %s746_s11, 4  ;;  %s390_s10 = int_to_ptr.vmem [resolvable:$true] %s389_s10  ;;  %s380_s12 = int_to_ptr.vmem [resolvable:$true] %s379_s12 }
  0x37   :  { %472 = vmatpush3.msra.mxu0 %v100_v1  ;;  %507 = vmatpush3.msra.mxu1 %v197_v5  ;;  %v95_v9 = vld [vmem:[#allocation5 + $0x50] sm:$0xff]  ;;  %v194_v10 = vld [vmem:[#allocation7 + $0x60] sm:$0xff]  ;;  %v94_v11 = vld [vmem:[#allocation5 + $0x48] sm:$0xff]  ;;  %s667_s13 = scalar_lea.vmem %s390_s10, 128  ;;  %p672_p7 = scmp.lt.s32.totalorder %s390_s10, %s390_s10 }
  0x38   :  { %473 = vmatprep.subr.mxu0 %v743_v0  ;;  %508 = vmatprep.subr.mxu1 %v743_v0  ;;  %v193_v12 = vld [vmem:[#allocation7 + $0x58] sm:$0xff]  ;;  %v93_v13 = vld [vmem:[#allocation5 + $0x40] sm:$0xff]  ;;  %v192_v14 = vld [vmem:[#allocation7 + $0x50] sm:$0xff]  ;;  %p668_p6 = scmp.ne.s32.totalorder %s390_s10, %s667_s13  ;;  %p673_p8 = scmp.lt.s32.totalorder %s667_s13, %s667_s13 }
  0x39   :  { %474 = vmatpush3.msra.mxu0 %v99_v2  ;;  %509 = vmatpush3.msra.mxu1 %v196_v7  ;;  %v92_v15 = vld [vmem:[#allocation5 + $0x38] sm:$0xff]  ;;  %v191_v16 = vld [vmem:[#allocation7 + $0x48] sm:$0xff]  ;;  %v91_v17 = vld [vmem:[#allocation5 + $0x30] sm:$0xff] }
  0x3a   :  { %475 = vmatprep.subr.mxu0 %v743_v0  ;;  %510 = vmatprep.subr.mxu1 %v743_v0  ;;  %v190_v18 = vld [vmem:[#allocation7 + $0x40] sm:$0xff]  ;;  %v90_v19 = vld [vmem:[#allocation5 + $0x28] sm:$0xff]  ;;  %v189_v20 = vld [vmem:[#allocation7 + $0x38] sm:$0xff]  ;;  %p674_p9 = por %p673_p8, %p672_p7 }
  0x3b   :  { %476 = vmatpush3.msra.mxu0 %v98_v3  ;;  %511 = vmatpush3.msra.mxu1 %v195_v8  ;;  %v89_v21 = vld [vmem:[#allocation5 + $0x20] sm:$0xff]  ;;  %v188_v22 = vld [vmem:[#allocation7 + $0x30] sm:$0xff]  ;;  %v88_v23 = vld [vmem:[#allocation5 + $0x18] sm:$0xff] }
  0x3c   :  { %477 = vmatprep.subr.mxu0 %v743_v0  ;;  %512 = vmatprep.subr.mxu1 %v743_v0  ;;  %v187_v24 = vld [vmem:[#allocation7 + $0x28] sm:$0xff]  ;;  %v87_v25 = vld [vmem:[#allocation5 + $0x10] sm:$0xff]  ;;  %v186_v26 = vld [vmem:[#allocation7 + $0x20] sm:$0xff]  ;;  %p675_p10 = pnand %p674_p9, %p668_p6 }
  0x3d   :  { %478 = vmatpush3.msra.mxu0 %v97_v4  ;;  %513 = vmatpush3.msra.mxu1 %v194_v10  ;;  %v86_v27 = vld [vmem:[#allocation5 + $0x8] sm:$0xff]  ;;  %v185_v28 = vld [vmem:[#allocation7 + $0x18] sm:$0xff]  ;;  %v85_v29 = vld [vmem:[#allocation5] sm:$0xff] }
  0x3e   :  { %479 = vmatprep.subr.mxu0 %v743_v0  ;;  %514 = vmatprep.subr.mxu1 %v743_v0  ;;  %v84_v30 = vld [vmem:[#allocation2] sm:$0xff]  ;;  %v184_v31 = vld [vmem:[#allocation7 + $0x10] sm:$0xff]  ;;  %v183_v32 = vld [vmem:[#allocation7 + $0x8] sm:$0xff] }
  0x3f   :  { %480 = vmatpush3.msra.mxu0 %v96_v6  ;;  %515 = vmatpush3.msra.mxu1 %v193_v12  ;;  %v182_v33 = vld [vmem:[#allocation7] sm:$0xff]  ;;  %v294_v34 = vld [vmem:[#allocation8 + $0x78] sm:$0xff]  ;;  %v293_v35 = vld [vmem:[#allocation8 + $0x70] sm:$0xff] }
  0x40   :  { %481 = vmatprep.subr.mxu0 %v743_v0  ;;  %516 = vmatprep.subr.mxu1 %v743_v0  ;;  %v292_v36 = vld [vmem:[#allocation8 + $0x68] sm:$0xff]  ;;  %v291_v37 = vld [vmem:[#allocation8 + $0x60] sm:$0xff]  ;;  %v290_v38 = vld [vmem:[#allocation8 + $0x58] sm:$0xff] }
  0x41   :  { %482 = vmatpush3.msra.mxu0 %v95_v9  ;;  %517 = vmatpush3.msra.mxu1 %v192_v14  ;;  %v289_v39 = vld [vmem:[#allocation8 + $0x50] sm:$0xff]  ;;  %v288_v40 = vld [vmem:[#allocation8 + $0x48] sm:$0xff]  ;;  %v287_v41 = vld [vmem:[#allocation8 + $0x40] sm:$0xff] }
  0x42   :  { %483 = vmatprep.subr.mxu0 %v743_v0  ;;  %518 = vmatprep.subr.mxu1 %v743_v0  ;;  %v286_v42 = vld [vmem:[#allocation8 + $0x38] sm:$0xff]  ;;  %v285_v43 = vld [vmem:[#allocation8 + $0x30] sm:$0xff]  ;;  %v284_v44 = vld [vmem:[#allocation8 + $0x28] sm:$0xff] }
  0x43   :  { %484 = vmatpush3.msra.mxu0 %v94_v11  ;;  %519 = vmatpush3.msra.mxu1 %v191_v16  ;;  %v283_v45 = vld [vmem:[#allocation8 + $0x20] sm:$0xff]  ;;  %v282_v46 = vld [vmem:[#allocation8 + $0x18] sm:$0xff]  ;;  %v281_v53 = vld [vmem:[#allocation8 + $0x10] sm:$0xff] }
  0x44   :  { %485 = vmatprep.subr.mxu0 %v743_v0  ;;  %520 = vmatprep.subr.mxu1 %v743_v0  ;;  %v417_v47 = vld [vmem:[%s893_s2] ss:$0 sm:$0xff]  ;;  %v280_v54 = vld [vmem:[#allocation8 + $0x8] sm:$0xff]  ;;  %v279_v55 = vld [vmem:[#allocation8] sm:$0xff] }
  0x45   :  { %486 = vmatpush3.msra.mxu0 %v93_v13  ;;  %521 = vmatpush3.msra.mxu1 %v190_v18  ;;  %v418_v56 = vld [vmem:[%s895_s4] ss:$0 sm:$0xff] }
  0x46   :  { %487 = vmatprep.subr.mxu0 %v743_v0  ;;  %522 = vmatprep.subr.mxu1 %v743_v0 }
  0x47   :  { %488 = vmatpush3.msra.mxu0 %v92_v15  ;;  %523 = vmatpush3.msra.mxu1 %v189_v20 }
  0x48   :  { %489 = vmatprep.subr.mxu0 %v743_v0  ;;  %524 = vmatprep.subr.mxu1 %v743_v0 }
  0x49   :  { %490 = vmatpush3.msra.mxu0 %v91_v17  ;;  %525 = vmatpush3.msra.mxu1 %v188_v22 }
  0x4a   :  { %491 = vmatprep.subr.mxu0 %v743_v0  ;;  %526 = vmatprep.subr.mxu1 %v743_v0 }
  0x4b   :  { %492 = vmatpush3.msra.mxu0 %v90_v19  ;;  %527 = vmatpush3.msra.mxu1 %v187_v24 }
  0x4c   :  { %493 = vmatprep.subr.mxu0 %v743_v0  ;;  %528 = vmatprep.subr.mxu1 %v743_v0 }
  0x4d   :  { %494 = vmatpush3.msra.mxu0 %v89_v21  ;;  %529 = vmatpush3.msra.mxu1 %v186_v26 }
  0x4e   :  { %495 = vmatprep.subr.mxu0 %v743_v0  ;;  %530 = vmatprep.subr.mxu1 %v743_v0 }
  0x4f   :  { %496 = vmatpush3.msra.mxu0 %v88_v23  ;;  %531 = vmatpush3.msra.mxu1 %v185_v28 }
  0x50   :  { %497 = vmatprep.subr.mxu0 %v743_v0  ;;  %532 = vmatprep.subr.mxu1 %v743_v0 }
  0x51   :  { %498 = vmatpush3.msra.mxu0 %v87_v25  ;;  %533 = vmatpush3.msra.mxu1 %v184_v31 }
  0x52   :  { %499 = vmatprep.subr.mxu0 %v743_v0  ;;  %534 = vmatprep.subr.mxu1 %v743_v0 }
  0x53   :  { %500 = vmatpush3.msra.mxu0 %v86_v27  ;;  %535 = vmatpush3.msra.mxu1 %v183_v32 }
  0x54   :  { %501 = vmatprep.subr.mxu0 %v743_v0  ;;  %536 = vmatprep.subr.mxu1 %v743_v0 }
  0x55   :  { %502 = vmatpush3.msra.mxu0 %v85_v29  ;;  %537 = vmatpush3.msra.mxu1 %v182_v33 }
  0x56   :  { %504 = vmatmul.mubr.f32.vlgmr.msra.gmra.mxu0 %v84_v30  ;;  %541 = vmatprep.subr.mxu0 %v743_v0 }
  0x57   :  { %573 = vmatprep.mubr.msk.f32.mxu0 %vm744_vm0, %v743_v0  ;;  %542 = vmatpush3.msra.mxu0 %v294_v34 }
  0x58   :  { %543 = vmatprep.subr.mxu0 %v743_v0 }
  0x59   :  { %544 = vmatpush3.msra.mxu0 %v293_v35 }
  0x5a   :  { %545 = vmatprep.subr.mxu0 %v743_v0 }
  0x5b   :  { %546 = vmatpush3.msra.mxu0 %v292_v36 }
  0x5c   :  { %547 = vmatprep.subr.mxu0 %v743_v0 }
  0x5d   :  { %548 = vmatpush3.msra.mxu0 %v291_v37 }
  0x5e   :  { %549 = vmatprep.subr.mxu0 %v743_v0 }
  0x5f   :  { %550 = vmatpush3.msra.mxu0 %v290_v38 }
  0x60   :  { %551 = vmatprep.subr.mxu0 %v743_v0 }
  0x61   :  { %552 = vmatpush3.msra.mxu0 %v289_v39 }
  0x62   :  { %553 = vmatprep.subr.mxu0 %v743_v0 }
  0x63   :  { %554 = vmatpush3.msra.mxu0 %v288_v40 }
  0x64   :  { %555 = vmatprep.subr.mxu0 %v743_v0 }
  0x65   :  { %556 = vmatpush3.msra.mxu0 %v287_v41 }
  0x66   :  { %557 = vmatprep.subr.mxu0 %v743_v0 }
  0x67   :  { %558 = vmatpush3.msra.mxu0 %v286_v42 }
  0x68   :  { %559 = vmatprep.subr.mxu0 %v743_v0 }
  0x69   :  { %560 = vmatpush3.msra.mxu0 %v285_v43 }
  0x6a   :  { %561 = vmatprep.subr.mxu0 %v743_v0 }
  0x6b   :  { %562 = vmatpush3.msra.mxu0 %v284_v44 }
  0x6c   :  { %563 = vmatprep.subr.mxu0 %v743_v0 }
  0x6d   :  { %564 = vmatpush3.msra.mxu0 %v283_v45 }
  0x6e   :  { %565 = vmatprep.subr.mxu0 %v743_v0 }
  0x6f   :  { %566 = vmatpush3.msra.mxu0 %v282_v46 }
  0x70   :  { %567 = vmatprep.subr.mxu0 %v743_v0 }
  0x71   :  { %568 = vmatpush3.msra.mxu0 %v281_v53 }
  0x72   :  { %569 = vmatprep.subr.mxu0 %v743_v0 }
  0x73   :  { %570 = vmatpush3.msra.mxu0 %v280_v54 }
  0x74   :  { %571 = vmatprep.subr.mxu0 %v743_v0 }
  0x75   :  { %572 = vmatpush3.msra.mxu0 %v279_v55 }
 0x116   :  { %v174_v48 = vpop.f32.mrf.mxu0 }
 0x117   :  { %v175_v49 = vadd.f32 %v417_v47, %v174_v48 }
 0x118   :  { %v505_v50 = vpop.f32.mrf.mxu0 }
 0x119   :  { %v179_v51 = vmul.f32 0.01, %v175_v49  ;;  %vm178_vm1 = vcmp.gt.f32.partialorder %v175_v49, 0.0 }
 0x11b   :  { %v180_v52 = vsel %vm178_vm1, %v175_v49, %v179_v51 }
 0x11c   :  { %539 = vmatmul.mubr.f32.vlgmr.msra.gmra.mxu1 %v180_v52  ;;  %181 = vst [vmem:[#allocation10] sm:$0xff] %v180_v52 }
 0x1dc   :  { %v271_v57 = vpop.f32.mrf.mxu1 }
 0x1dd   :  { %v272_v58 = vadd.f32 %v418_v56, %v271_v57 }
 0x1de   :  { %v540_v59 = vpop.f32.mrf.mxu1 }
 0x1df   :  { %vm275_vm2 = vcmp.gt.f32.partialorder %v272_v58, 0.0  ;;  %v276_v60 = vmul.f32 0.01, %v272_v58 }
 0x1e1   :  { %v277_v61 = vsel %vm275_vm2, %v272_v58, %v276_v60 }
 0x1e2   :  { %574 = vmatmul.mubr.f32.vlgmr.msra.gmra.mxu0 %v277_v61  ;;  %278 = vst [vmem:[#allocation11] sm:$0xff] %v277_v61 }
 0x1e3   :  { %678 = shalt.err (!%p675_p10)
}
 0x1e4   :  { %392 = dma.vmem_to_hbm [thread:$0]  %s390_s10, 128, %s899_s8, [#allocation12]  }
 0x1e5   :  { %s687_s15 = scalar_lea.vmem %s380_s12, 128  ;;  %p692_p12 = scmp.lt.s32.totalorder %s380_s12, %s380_s12 }
 0x1e6   :  { %p688_p11 = scmp.ne.s32.totalorder %s380_s12, %s687_s15  ;;  %p693_p13 = scmp.lt.s32.totalorder %s687_s15, %s687_s15 }
 0x1e8   :  { %p694_p0 = por %p693_p13, %p692_p12 }
 0x1ea   :  { %p695_p1 = pnand %p694_p0, %p688_p11 }
 0x1ec   :  { %698 = shalt.err (!%p695_p1)
}
 0x1ed   :  { %382 = dma.vmem_to_hbm [thread:$0]  %s380_s12, 128, %s898_s7, [#allocation4]   ;;  %v419_v62 = vld [vmem:[%s897_s6] ss:$0 sm:$0xff] }
 0x1ee   :  { %s747_s20 = smov [#allocation13]  }
 0x1ef   :  { %s399_s21 = sshll.u32 %s747_s20, 4  ;;  %s400_s21 = int_to_ptr.vmem [resolvable:$true] %s399_s21 }
 0x1f0   :  { %s707_s8 = scalar_lea.vmem %s400_s21, 128  ;;  %p712_p3 = scmp.lt.s32.totalorder %s400_s21, %s400_s21 }
 0x1f1   :  { %p708_p2 = scmp.ne.s32.totalorder %s400_s21, %s707_s8  ;;  %p713_p4 = scmp.lt.s32.totalorder %s707_s8, %s707_s8 }
 0x1f3   :  { %p714_p5 = por %p713_p4, %p712_p3 }
 0x1f5   :  { %p715_p6 = pnand %p714_p5, %p708_p2 }
 0x2a2   :  { %v368_v63 = vpop.f32.mrf.mxu0 }
 0x2a3   :  { %v369_v0 = vadd.f32 %v419_v62, %v368_v63 }
 0x2a4   :  { %v575_v1 = vpop.f32.mrf.mxu0 }
 0x2a5   :  { %372 = vst [vmem:[#allocation13] sm:$0xff] %v369_v0 }
 0x2a6   :  { %718 = shalt.err (!%p715_p6)
}
 0x2a7   :  { %402 = dma.vmem_to_hbm [thread:$0]  %s400_s21, 128, %s900_s9, [#allocation12]  }
 0x2a8   :  { %733 = dma.done.wait [#allocation4], 128  }
 0x2a9   :  { %734 = vsyncadd [#allocation4], 4294967168 }
 0x2aa   :  { %735 = dma.done.wait [#allocation12], 256  }
 0x2ab   :  { %736 = vsyncadd [#allocation12], 4294967040 }
 0x2ac   :  { %412 = vsyncpa [#allocation3], 1 }
 0x2ad   :  { %413 = vsyncpa [#allocation6], 1 }
 0x2ae   :  { %414 = vsyncpa [#allocation9], 1 }
 0x2af   :  { %415 = vsyncpa [#allocation4], 1 }
 0x2b0   :  { %416 = vsyncpa [#allocation12], 1 }

</bundles_post_ra>
